<compile_context>
chip_gen: v7x
topology: tpu7x:2x2x1
jax: 0.10.0
libtpu: 0.0.40
codegen_flags: <defaults>
</compile_context>

<pallas_src>
import functools

import jax
import jax.numpy as jnp
from jax.experimental import pallas as pl
from jax.experimental.pallas import tpu as pltpu


def _supervised_loss_kernel(x_ref, w_ref, b_ref, y_ref,
                            loss_ref, logits_ref, acc_ref,
                            *, inv_t):
    t = pl.program_id(1)
    nt = pl.num_programs(1)

    @pl.when(t == 0)
    def _():
        acc_ref[...] = jnp.zeros_like(acc_ref)

    # Accumulate the T-group sum in an f32 scratch (sublane reduce hides under
    # the x DMA).  astype is a no-op for f32 inputs; keeps bf16 inputs
    # accumulating in f32 without an upcast HBM copy.
    acc_ref[...] += jnp.sum(x_ref[...].astype(jnp.float32), axis=1)

    @pl.when(t == nt - 1)
    def _():
        # w_stack already folds the intra-128-lane group reduction; scale the
        # tiny (tile_b, C) result instead of the (tile_b, 128) accumulator.
        logits = (jnp.dot(acc_ref[...], w_ref[...],
                          preferred_element_type=jnp.float32) * inv_t
                  + b_ref[...])
        logits_ref[...] = logits.astype(logits_ref.dtype)

        # BCEWithLogits, numerically stable: max(z,0) - z*y + log1p(exp(-|z|))
        y = y_ref[...].astype(jnp.float32)
        z = logits
        per_elem = jnp.maximum(z, 0.0) - z * y + jnp.log1p(jnp.exp(-jnp.abs(z)))
        tile_sum = jnp.sum(per_elem)                       # unnormalized partial loss
        loss_ref[...] = jnp.broadcast_to(tile_sum, loss_ref.shape)


def _pick_tile(dim, max_tile):
    """Largest multiple-of-8 tile <= max_tile that divides dim, else dim."""
    if dim <= max_tile:
        return dim
    t = (max_tile // 8) * 8
    while t >= 8:
        if dim % t == 0:
            return t
        t -= 8
    # TODO(synk): for large B with no multiple-of-8 divisor this falls back to
    # the full dim; tile_tg below shrinks to compensate, so VMEM stays bounded.
    return dim


def supervised_loss_forward(x, y, weight, bias):
    """x: (B, T, F), y: (B, C), weight: (C, F), bias: (C,)."""
    B, T, F = x.shape
    C = weight.shape[0]
    out_dtype = jnp.promote_types(x.dtype, weight.dtype)

    # ---- lane-densify the minor dim: (B, T, F) -> (B, T/G, G*F) ------------
    G = 1
    if F < 128 and 128 % F == 0:
        G = 128 // F
    Fd = G * F

    # ---- B tiling: keep nb >= 2 when possible so both v7x TCs get work -----
    tile_b_cap = 128
    if 16 <= B <= 256:
        tile_b_cap = min(tile_b_cap, max(8, (B // 16) * 8))
    tile_b = _pick_tile(B, tile_b_cap)
    nb = B // tile_b

    # ---- T-group tiling with lane-padding-aware VMEM accounting ------------
    itemsize = x.dtype.itemsize
    lane_w = ((Fd + 127) // 128) * 128              # minor dim is lane-padded in VMEM
    row_bytes = tile_b * lane_w * itemsize          # one time-group row of an x tile
    align = 8 if itemsize >= 4 else (16 if itemsize == 2 else 32)
    budget = 8 * 1024 * 1024                        # ~8 MiB per x buffer (16 MiB dbl-buf)

    Tg = -(-T // G)                                 # ceil(T / G) time groups
    tile_tg = max(align, (budget // max(row_bytes, 1)) // align * align)
    if tile_tg >= Tg:
        tile_tg = Tg                                # full extent -> always legal
        Tg_pad = Tg
    else:
        Tg_pad = -(-Tg // tile_tg) * tile_tg        # pad so tile_tg divides evenly
    ngt = Tg_pad // tile_tg

    # Zero-pad T (zeros don't change the sum; mean still divides by true T),
    # then reshape to the lane-dense layout.  Reshape is free when no pad.
    T_full = Tg_pad * G
    if T_full != T:
        x = jnp.pad(x, ((0, 0), (0, T_full - T), (0, 0)))
    x_dense = x.reshape(B, Tg_pad, Fd)

    # Stack W^T G times so the dot folds the intra-group reduction:
    # (acc @ w_stack)[b, c] == sum_t x[b, t, :] @ W.T[:, c]
    w_t = weight.T.astype(jnp.float32)              # (F, C)
    w_stack = jnp.tile(w_t, (G, 1))                 # (G*F, C)
    b_row = bias.astype(jnp.float32).reshape(1, C)  # (1, C)

    kernel = functools.partial(_supervised_loss_kernel, inv_t=1.0 / T)

    cost = pl.CostEstimate(
        flops=int(B * Tg_pad * Fd + 2 * B * Fd * C + 6 * B * C),
        transcendentals=int(2 * B * C),
        bytes_accessed=int(x_dense.size * itemsize
                           + 4 * (w_stack.size + b_row.size + 2 * y.size
                                  + nb * 8 * 128)),
    )

    loss_parts, logits = pl.pallas_call(
        kernel,
        out_shape=(
            jax.ShapeDtypeStruct((nb, 8, 128), jnp.float32),  # per-B-tile partial sums
            jax.ShapeDtypeStruct((B, C), out_dtype),          # logits (unpadded)
        ),
        grid_spec=pltpu.PrefetchScalarGridSpec(
            num_scalar_prefetch=0,
            grid=(nb, ngt),
            in_specs=[
                pl.BlockSpec((tile_b, tile_tg, Fd), lambda i, t: (i, t, 0)),  # x (dense)
                pl.BlockSpec((Fd, C), lambda i, t: (0, 0)),                   # W^T stacked
                pl.BlockSpec((1, C), lambda i, t: (0, 0)),                    # bias
                pl.BlockSpec((tile_b, C), lambda i, t: (i, 0)),               # y
            ],
            out_specs=(
                pl.BlockSpec((1, 8, 128), lambda i, t: (i, 0, 0)),            # loss parts
                pl.BlockSpec((tile_b, C), lambda i, t: (i, 0)),               # logits
            ),
            scratch_shapes=[pltpu.VMEM((tile_b, Fd), jnp.float32)],
        ),
        compiler_params=pltpu.CompilerParams(
            dimension_semantics=("parallel", "arbitrary"),
            vmem_limit_bytes=32 * 1024 * 1024,
        ),
        cost_estimate=cost,
    )(x_dense, w_stack, b_row, y)

    loss = jnp.sum(loss_parts[:, 0, 0]) / (B * C)
    return loss, logits


def _reference_forward(x, y, weight, bias):
    pooled = jnp.mean(x, axis=1)
    logits = pooled @ weight.T + bias
    z = logits
    per_elem = jnp.maximum(z, 0.0) - z * y + jnp.log1p(jnp.exp(-jnp.abs(z)))
    return jnp.mean(per_elem), logits


if __name__ == "__main__":
    # Small, deterministic shapes consistent with the module.
    B, T, F, C = 2, 8, 32, 4   # batch, seq, n_features, n_classes

    key = jax.random.PRNGKey(0)
    kx, ky, kw, kb = jax.random.split(key, 4)

    x = jax.random.normal(kx, (B, T, F), dtype=jnp.float32)
    # BCEWithLogitsLoss targets: float labels in [0, 1].
    y = jax.random.bernoulli(ky, 0.5, (B, C)).astype(jnp.float32)

    # nn.Linear-style init: uniform(-1/sqrt(F), 1/sqrt(F)).
    bound = 1.0 / (F ** 0.5)
    weight = jax.random.uniform(kw, (C, F), jnp.float32, -bound, bound)
    bias = jax.random.uniform(kb, (C,), jnp.float32, -bound, bound)

    loss, logits = supervised_loss_forward(x, y, weight, bias)
    loss = jax.block_until_ready(loss)
    logits = jax.block_until_ready(logits)

    ref_loss, ref_logits = _reference_forward(x, y, weight, bias)
    assert jnp.allclose(loss, ref_loss, atol=1e-5, rtol=1e-5)
    assert jnp.allclose(logits, ref_logits, atol=1e-5, rtol=1e-5)

    print("KERNEL_OK")
</pallas_src>

<mosaic_0001>
module attributes {stable_mosaic.version = 11 : i64} {
  func.func @_supervised_loss_kernel(%arg0: i32, %arg1: i32, %arg2: memref<2x2x128xf32, #tpu.memory_space<vmem>>, %arg3: memref<128x4xf32, #tpu.memory_space<vmem>>, %arg4: memref<1x4xf32, #tpu.memory_space<vmem>>, %arg5: memref<2x4xf32, #tpu.memory_space<vmem>>, %arg6: memref<1x8x128xf32, #tpu.memory_space<vmem>>, %arg7: memref<2x4xf32, #tpu.memory_space<vmem>>, %arg8: memref<2x128xf32, #tpu.memory_space<vmem>>) attributes {dimension_semantics = [#tpu.dimension_semantics<parallel>, #tpu.dimension_semantics<arbitrary>], iteration_bounds = array<i64: 1, 1>, scalar_prefetch = 0 : i64, scratch_operands = 1 : i64, tpu.core_type = #tpu.core_type<tc>, window_params = [{transform_indices = @transform_0, window_bounds = array<i64: 2, 2, 128>}, {pipeline_mode = #tpu.pipeline_mode<synchronous>, transform_indices = @transform_1, window_bounds = array<i64: 128, 4>}, {pipeline_mode = #tpu.pipeline_mode<synchronous>, transform_indices = @transform_2, window_bounds = array<i64: 1, 4>}, {transform_indices = @transform_3, window_bounds = array<i64: 2, 4>}, {transform_indices = @transform_4, window_bounds = array<i64: 1, 8, 128>}, {transform_indices = @transform_5, window_bounds = array<i64: 2, 4>}]} {
    %c0_i32 = arith.constant 0 : i32
    %0 = arith.cmpi eq, %arg1, %c0_i32 : i32
    %1 = arith.extui %0 : i1 to i32
    %c0_i32_0 = arith.constant 0 : i32
    %2 = arith.cmpi ne, %1, %c0_i32_0 : i32
    scf.if %2 {
      %cst_9 = arith.constant 0.000000e+00 : f32
      %11 = vector.broadcast %cst_9 : f32 to vector<2x128xf32>
      %c0_10 = arith.constant 0 : index
      %c0_11 = arith.constant 0 : index
      %12 = vector.load %arg8[%c0_10, %c0_11] : memref<2x128xf32, #tpu.memory_space<vmem>>, vector<2x128xf32>
      tpu.vector_store %arg8[%c0_10, %c0_11], %11 {strides = array<i32>} : memref<2x128xf32, #tpu.memory_space<vmem>>, vector<2x128xf32>,
    } else {
    }
    %c0 = arith.constant 0 : index
    %c0_1 = arith.constant 0 : index
    %3 = vector.load %arg8[%c0, %c0_1] : memref<2x128xf32, #tpu.memory_space<vmem>>, vector<2x128xf32>
    %c0_2 = arith.constant 0 : index
    %c0_3 = arith.constant 0 : index
    %c0_4 = arith.constant 0 : index
    %4 = vector.load %arg2[%c0_2, %c0_3, %c0_4] : memref<2x2x128xf32, #tpu.memory_space<vmem>>, vector<2x2x128xf32>
    %cst = arith.constant dense<0.000000e+00> : vector<2x128xf32>
    %5 = vector.multi_reduction <add>, %4, %cst [1] : vector<2x2x128xf32> to vector<2x128xf32>
    %6 = arith.addf %3, %5 : vector<2x128xf32>
    %c0_5 = arith.constant 0 : index
    %c0_6 = arith.constant 0 : index
    %7 = vector.load %arg8[%c0_5, %c0_6] : memref<2x128xf32, #tpu.memory_space<vmem>>, vector<2x128xf32>
    tpu.vector_store %arg8[%c0_5, %c0_6], %6 {strides = array<i32>} : memref<2x128xf32, #tpu.memory_space<vmem>>, vector<2x128xf32>,
    %c0_i32_7 = arith.constant 0 : i32
    %8 = arith.cmpi eq, %arg1, %c0_i32_7 : i32
    %9 = arith.extui %8 : i1 to i32
    %c0_i32_8 = arith.constant 0 : i32
    %10 = arith.cmpi ne, %9, %c0_i32_8 : i32
    scf.if %10 {
      %c0_9 = arith.constant 0 : index
      %c0_10 = arith.constant 0 : index
      %11 = vector.load %arg8[%c0_9, %c0_10] : memref<2x128xf32, #tpu.memory_space<vmem>>, vector<2x128xf32>
      %c0_11 = arith.constant 0 : index
      %c0_12 = arith.constant 0 : index
      %12 = vector.load %arg3[%c0_11, %c0_12] : memref<128x4xf32, #tpu.memory_space<vmem>>, vector<128x4xf32>
      %cst_13 = arith.constant dense<0.000000e+00> : vector<2x4xf32>
      %13 = tpu.matmul %11, %12, %cst_13 {dimension_numbers = #tpu.dot_dimension_numbers<[1], [0], [0], [1], [0, 0, 1, 1], [], []>} : vector<2x128xf32>, vector<128x4xf32>, vector<2x4xf32> -> vector<2x4xf32>
      %cst_14 = arith.constant 1.250000e-01 : f32
      %14 = vector.broadcast %cst_14 : f32 to vector<2x4xf32>
      %15 = arith.mulf %13, %14 : vector<2x4xf32>
      %c0_15 = arith.constant 0 : index
      %c0_16 = arith.constant 0 : index
      %16 = vector.load %arg4[%c0_15, %c0_16] : memref<1x4xf32, #tpu.memory_space<vmem>>, vector<1x4xf32>
      %17 = vector.broadcast %16 : vector<1x4xf32> to vector<2x4xf32>
      %18 = arith.addf %15, %17 : vector<2x4xf32>
      %c0_17 = arith.constant 0 : index
      %c0_18 = arith.constant 0 : index
      %19 = vector.load %arg7[%c0_17, %c0_18] : memref<2x4xf32, #tpu.memory_space<vmem>>, vector<2x4xf32>
      tpu.vector_store %arg7[%c0_17, %c0_18], %18 {strides = array<i32>} : memref<2x4xf32, #tpu.memory_space<vmem>>, vector<2x4xf32>,
      %c0_19 = arith.constant 0 : index
      %c0_20 = arith.constant 0 : index
      %20 = vector.load %arg5[%c0_19, %c0_20] : memref<2x4xf32, #tpu.memory_space<vmem>>, vector<2x4xf32>
      %cst_21 = arith.constant 0.000000e+00 : f32
      %21 = vector.broadcast %cst_21 : f32 to vector<2x4xf32>
      %22 = arith.maximumf %18, %21 : vector<2x4xf32>
      %23 = arith.mulf %18, %20 : vector<2x4xf32>
      %24 = arith.subf %22, %23 : vector<2x4xf32>
      %25 = math.absf %18 : vector<2x4xf32>
      %cst_22 = arith.constant 0.000000e+00 : f32
      %26 = vector.broadcast %cst_22 : f32 to vector<2x4xf32>
      %27 = arith.subf %26, %25 : vector<2x4xf32>
      %28 = math.exp %27 : vector<2x4xf32>
      %29 = math.log1p %28 : vector<2x4xf32>
      %30 = arith.addf %24, %29 : vector<2x4xf32>
      %31 = vector.shape_cast %30 : vector<2x4xf32> to vector<1x2x4xf32>
      %cst_23 = arith.constant dense<0.000000e+00> : vector<1xf32>
      %32 = vector.multi_reduction <add>, %31, %cst_23 [1, 2] : vector<1x2x4xf32> to vector<1xf32>
      %33 = vector.shape_cast %32 : vector<1xf32> to vector<1x1x1xf32>
      %34 = vector.extract %33[0, 0, 0] : f32 from vector<1x1x1xf32>
      %35 = vector.broadcast %34 : f32 to vector<1x8x128xf32>
      %c0_24 = arith.constant 0 : index
      %c0_25 = arith.constant 0 : index
      %c0_26 = arith.constant 0 : index
      %36 = vector.load %arg6[%c0_24, %c0_25, %c0_26] : memref<1x8x128xf32, #tpu.memory_space<vmem>>, vector<1x8x128xf32>
      tpu.vector_store %arg6[%c0_24, %c0_25, %c0_26], %35 {strides = array<i32>} : memref<1x8x128xf32, #tpu.memory_space<vmem>>, vector<1x8x128xf32>,
    } else {
    }
    return
  }
  func.func @transform_0(%arg0: i32, %arg1: i32) -> (i32, i32, i32) {
    %c0_i32 = arith.constant 0 : i32
    %c0_i32_0 = arith.constant 0 : i32
    return %arg0, %arg1, %c0_i32 : i32, i32, i32
  }
  func.func @transform_1(%arg0: i32, %arg1: i32) -> (i32, i32) {
    %c0_i32 = arith.constant 0 : i32
    %c0_i32_0 = arith.constant 0 : i32
    %c0_i32_1 = arith.constant 0 : i32
    return %c0_i32, %c0_i32_0 : i32, i32
  }
  func.func @transform_2(%arg0: i32, %arg1: i32) -> (i32, i32) {
    %c0_i32 = arith.constant 0 : i32
    %c0_i32_0 = arith.constant 0 : i32
    %c0_i32_1 = arith.constant 0 : i32
    return %c0_i32, %c0_i32_0 : i32, i32
  }
  func.func @transform_3(%arg0: i32, %arg1: i32) -> (i32, i32) {
    %c0_i32 = arith.constant 0 : i32
    %c0_i32_0 = arith.constant 0 : i32
    return %arg0, %c0_i32 : i32, i32
  }
  func.func @transform_4(%arg0: i32, %arg1: i32) -> (i32, i32, i32) {
    %c0_i32 = arith.constant 0 : i32
    %c0_i32_0 = arith.constant 0 : i32
    %c0_i32_1 = arith.constant 0 : i32
    return %arg0, %c0_i32, %c0_i32_0 : i32, i32, i32
  }
  func.func @transform_5(%arg0: i32, %arg1: i32) -> (i32, i32) {
    %c0_i32 = arith.constant 0 : i32
    %c0_i32_0 = arith.constant 0 : i32
    return %arg0, %c0_i32 : i32, i32
  }
}

</mosaic_0001>

<bundles_post_ra>
// kernel: tpu_custom_call.1
= control target key start
LH: loop header
LB: loop body
LE: loop exit
PB: predicated region body
PF: predicated region fallthrough
CT: control target
= control target key end

     0   :  { %11 = vsyncpa [#allocation4], 0  ;;  %v346_v3 = vmov 0.0|0.0   ;;  %v347_v6 = vmov 0.0   ;;  %vm348_vm0 = vmmov 0   ;;  %vm29_vm1 = vcmask 1041408   ;;  %s475_s0 = inlined_call_operand.vmem [shape: f32[2,2,128], index: 0, kind: input, shape index: {}]   ;;  %s476_s1 = inlined_call_operand.vmem [shape: f32[128,4], index: 1, kind: input, shape index: {}]   ;;  %s477_s2 = inlined_call_operand.vmem [shape: f32[1,4], index: 2, kind: input, shape index: {}]   ;;  %s478_s3 = inlined_call_operand.vmem [shape: f32[2,4], index: 3, kind: input, shape index: {}]   ;;  %s479_s4 = inlined_call_operand.hbm [shape: f32[1,8,128], index: 4, kind: output, shape index: {0}]   ;;  %s480_s5 = inlined_call_operand.hbm [shape: f32[2,4], index: 5, kind: output, shape index: {1}]  }
   0x1   :  { %v55_v0 = vld [vmem:[%s476_s1] sm:$0xff]  ;;  %v56_v1 = vld [vmem:[%s476_s1 + $0x8] sm:$0xff]  ;;  %v57_v2 = vld [vmem:[%s476_s1 + $0x10] sm:$0xff]  ;;  %263 = vmatprep.subr.bf16.mxu0 %v346_v3  ;;  %25 = vst [vmem:[#allocation2] sm:$0x3] %v347_v6  ;;  %260 = vmatprep.mubr.msk.f32.mxu0 %vm348_vm0, %v347_v6 }
   0x2   :  { %v264_v4 = vpack.c.bf16 %v56_v1, %v55_v0  ;;  %v58_v5 = vld [vmem:[%s476_s1 + $0x18] sm:$0xff]  ;;  %v59_v8 = vld [vmem:[%s476_s1 + $0x20] sm:$0xff]  ;;  %v60_v9 = vld [vmem:[%s476_s1 + $0x28] sm:$0xff] }
   0x3   :  { %v267_v7 = vpack.c.bf16 %v58_v5, %v57_v2  ;;  %v27_v10 = vld [vmem:[%s475_s0] sm:$0x3]  ;;  %v28_v11 = vld [vmem:[%s475_s0 + $0x2] sm:$0x3] }
   0x4   :  { %265 = vmatpush3.bf16.msra.mxu0 %v264_v4  ;;  %v30_v12 = vsel %vm29_vm1, %v27_v10, 0.0  ;;  %v37_v13 = vsel %vm29_vm1, %v28_v11, 0.0 }
   0x5   :  { %266 = vmatprep.subr.bf16.mxu0 %v346_v3 }
   0x6   :  { %12 = vsyncpa [#allocation6], 0  ;;  %v270_v14 = vpack.c.bf16 %v60_v9, %v59_v8  ;;  %v31_v15 = vrot.slane %v30_v12, 4  ;;  %v38_v16 = vrot.slane %v37_v13, 4  ;;  %v61_v17 = vld [vmem:[%s476_s1 + $0x30] sm:$0xff]  ;;  %v62_v18 = vld [vmem:[%s476_s1 + $0x38] sm:$0xff] }
   0x7   :  { %v273_v21 = vpack.c.bf16 %v62_v18, %v61_v17  ;;  %v63_v24 = vld [vmem:[%s476_s1 + $0x40] sm:$0xff]  ;;  %v64_v25 = vld [vmem:[%s476_s1 + $0x48] sm:$0xff]  ;;  %v65_v31 = vld [vmem:[%s476_s1 + $0x50] sm:$0xff]  ;;  %vm46_vm2 = vcmask 1041409   ;;  %vm150_vm3 = vcmask 25600  }
   0x8   :  { %268 = vmatpush3.bf16.msra.mxu0 %v267_v7  ;;  %v32_v19 = vadd.f32 %v31_v15, %v30_v12  ;;  %v39_v20 = vadd.f32 %v38_v16, %v37_v13  ;;  %v276_v28 = vpack.c.bf16 %v64_v25, %v63_v24  ;;  %v66_v32 = vld [vmem:[%s476_s1 + $0x58] sm:$0xff]  ;;  %v26_v33 = vld [vmem:[#allocation2] sm:$0x3]  ;;  %v68_v39 = vld [vmem:[%s476_s1 + $0x68] sm:$0xff] }
   0x9   :  { %269 = vmatprep.subr.bf16.mxu0 %v346_v3  ;;  %v279_v36 = vpack.c.bf16 %v66_v32, %v65_v31  ;;  %v67_v38 = vld [vmem:[%s476_s1 + $0x60] sm:$0xff]  ;;  %v69_v42 = vld [vmem:[%s476_s1 + $0x70] sm:$0xff]  ;;  %v70_v43 = vld [vmem:[%s476_s1 + $0x78] sm:$0xff] }
   0xa   :  { %v33_v22 = vrot.slane %v32_v19, 2  ;;  %v40_v23 = vrot.slane %v39_v20, 2  ;;  %v282_v41 = vpack.c.bf16 %v68_v39, %v67_v38  ;;  %v285_v44 = vpack.c.bf16 %v70_v43, %v69_v42  ;;  %v210_v47 = vld [vmem:[%s477_s2] ss:$0 sm:$0xff]  ;;  %s349_s2 = smov [#allocation5]  }
   0xb   :  { %v152_v57 = vld [vmem:[%s478_s3] sm:$0x3]  ;;  %s198_s6 = sshll.u32 %s349_s2, 4  ;;  %s199_s6 = int_to_ptr.vmem [resolvable:$true] %s198_s6 }
   0xc   :  { %271 = vmatpush3.bf16.msra.mxu0 %v270_v14  ;;  %v34_v26 = vadd.f32 %v33_v22, %v32_v19  ;;  %v41_v27 = vadd.f32 %v40_v23, %v39_v20  ;;  %s298_s7 = scalar_lea.vmem %s199_s6, 32  ;;  %p303_p1 = scmp.lt.s32.totalorder %s199_s6, %s199_s6 }
   0xd   :  { %272 = vmatprep.subr.bf16.mxu0 %v346_v3  ;;  %p299_p0 = scmp.ne.s32.totalorder %s199_s6, %s298_s7  ;;  %p304_p2 = scmp.lt.s32.totalorder %s298_s7, %s298_s7 }
   0xe   :  { %v35_v29 = vrot.slane %v34_v26, 1  ;;  %v42_v30 = vrot.slane %v41_v27, 1 }
   0xf   :  { %p305_p3 = por %p304_p2, %p303_p1 }
  0x10   :  { %274 = vmatpush3.bf16.msra.mxu0 %v273_v21  ;;  %v36_v34 = vadd.f32 %v35_v29, %v34_v26  ;;  %v43_v35 = vadd.f32 %v42_v30, %v41_v27 }
  0x11   :  { %275 = vmatprep.subr.bf16.mxu0 %v346_v3  ;;  %p306_p4 = pnand %p305_p3, %p299_p0 }
  0x12   :  { %v47_v37 = vsel %vm46_vm2, %v43_v35, %v36_v34 }
  0x13   :  { %v49_v40 = vadd.f32 %v47_v37, %v26_v33 }
  0x14   :  { %277 = vmatpush3.bf16.msra.mxu0 %v276_v28 }
  0x15   :  { %278 = vmatprep.subr.bf16.mxu0 %v346_v3  ;;  %50 = vst [vmem:[#allocation2] sm:$0x3] %v49_v40 }
  0x18   :  { %280 = vmatpush3.bf16.msra.mxu0 %v279_v36 }
  0x19   :  { %281 = vmatprep.subr.bf16.mxu0 %v346_v3 }
  0x1c   :  { %283 = vmatpush3.bf16.msra.mxu0 %v282_v41  ;;  %v54_v45 = vld [vmem:[#allocation2] sm:$0x3] }
  0x1d   :  { %284 = vmatprep.subr.bf16.mxu0 %v346_v3 }
  0x20   :  { %286 = vmatpush3.bf16.msra.mxu0 %v285_v44 }
  0x23   :  { %261 = vmatmul.mubr.f32.vlgmr.msra.gmra.mrb[0].mxu0 %v54_v45 }
  0xf6   :  { %v137_v46 = vpop.f32.mrb[0].mxu0 }
  0xf7   :  { %v141_v48 = vmul.f32 0.125, %v137_v46  ;;  %v262_v49 = vpop.f32.mrb[1].mxu0 }
  0xf9   :  { %v149_v50 = vadd.f32 %v210_v47, %v141_v48 }
  0xfb   :  { %v156_v51 = vand.u32 2147483647, %v149_v50  ;;  %151 = vst.msk [vmem:[#allocation5] sm:$0x3] %vm150_vm3, %v149_v50  ;;  %v153_v59 = vmax.f32 %v149_v50, 0.0  ;;  %v154_v60 = vmul.f32 %v152_v57, %v149_v50 }
  0xfd   :  { %v157_v52 = vsub.f32 0.0, %v156_v51  ;;  %v155_v1 = vsub.f32 %v153_v59, %v154_v60 }
  0xff   :  { %v158_v53 = vmul.f32 1.442695, %v157_v52 }
 0x101   :  { %294 = vpow2.f32 %v158_v53 }
 0x10b   :  { %v295_v54 = vpop.eup %294 }
 0x10c   :  { %v160_v55 = vadd.f32 1.0, %v295_v54  ;;  %v163_v56 = vmul.f32 -0.5, %v295_v54  ;;  %v166_v61 = vand.u32 2147483647, %v295_v54 }
 0x10e   :  { %296 = vlog2.f32 %v160_v55  ;;  %v164_v58 = vadd.f32 1.0, %v163_v56  ;;  %vm167_vm4 = vcmp.lt.f32.partialorder %v166_v61, 0.0004427343 }
 0x110   :  { %v165_v0 = vmul.f32 %v295_v54, %v164_v58 }
 0x118   :  { %v297_v62 = vpop.eup %296 }
 0x119   :  { %v162_v63 = vmul.f32 0.6931472, %v297_v62 }
 0x11b   :  { %v168_v2 = vsel %vm167_vm4, %v165_v0, %v162_v63 }
 0x11c   :  { %v169_v3 = vadd.f32 %v168_v2, %v155_v1 }
 0x11e   :  { %v170_v4 = vsel %vm150_vm3, %v169_v3, 0.0 }
 0x11f   :  { %171 = vadd.xlane.f32.xlu0 %v170_v4 }
 0x120   :  { %309 = shalt.err (!%p306_p4)
}
 0x121   :  { %s310_s9 = scalar_lea.hbm %s480_s5, 32 }
 0x122   :  { %p311_p5 = scmp.ne.s32.totalorder %s480_s5, %s310_s9  ;;  %p314_p6 = scmp.lt.u32.totalorder %s310_s9, %s480_s5 }
 0x124   :  { %p316_p7 = pnand %p314_p6, %p311_p5 }
 0x126   :  { %319 = shalt.err (!%p316_p7)
}
 0x127   :  { %201 = dma.vmem_to_hbm [thread:$0]  %s199_s6, 32, %s480_s5, [#allocation6]  }
 0x128   :  { %s350_s15 = smov [#allocation3]  }
 0x129   :  { %s188_s16 = sshll.u32 %s350_s15, 4  ;;  %s189_s16 = int_to_ptr.vmem [resolvable:$true] %s188_s16 }
 0x12a   :  { %s320_s18 = scalar_lea.vmem %s189_s16, 128  ;;  %p325_p9 = scmp.lt.s32.totalorder %s189_s16, %s189_s16 }
 0x12b   :  { %p321_p8 = scmp.ne.s32.totalorder %s189_s16, %s320_s18  ;;  %p326_p10 = scmp.lt.s32.totalorder %s320_s18, %s320_s18 }
 0x12d   :  { %p327_p11 = por %p326_p10, %p325_p9 }
 0x12f   :  { %p328_p12 = pnand %p327_p11, %p321_p8 }
 0x1ac   :  { %v172_v5 = vpop.xlane.xlu0 %171 }
 0x1ad   :  { %v173_v6 = vrot.slane %v172_v5, 4 }
 0x1af   :  { %v174_v7 = vadd.f32 %v173_v6, %v172_v5 }
 0x1b1   :  { %v175_v8 = vrot.slane %v174_v7, 2 }
 0x1b3   :  { %v176_v9 = vadd.f32 %v175_v8, %v174_v7 }
 0x1b5   :  { %v177_v10 = vrot.slane %v176_v9, 1 }
 0x1b7   :  { %v178_v11 = vadd.f32 %v177_v10, %v176_v9 }
 0x1b9   :  { %287 = vpush %v178_v11 }
 0x1ea   :  { %s288_s17 = spop %287 }
 0x1eb   :  { %v180_v12 = vstv %s288_s17 }
 0x1ec   :  { %181 = vst [vmem:[#allocation3] sm:$0xff] %v180_v12 }
 0x1ed   :  { %331 = shalt.err (!%p328_p12)
}
 0x1ee   :  { %s332_s20 = scalar_lea.hbm %s479_s4, 128 }
 0x1ef   :  { %p333_p13 = scmp.ne.s32.totalorder %s479_s4, %s332_s20  ;;  %p336_p0 = scmp.lt.u32.totalorder %s332_s20, %s479_s4 }
 0x1f1   :  { %p338_p1 = pnand %p336_p0, %p333_p13 }
 0x1f3   :  { %341 = shalt.err (!%p338_p1)
}
 0x1f4   :  { %191 = dma.vmem_to_hbm [thread:$0]  %s189_s16, 128, %s479_s4, [#allocation4]  }
 0x1f5   :  { %342 = dma.done.wait [#allocation4], 128  }
 0x1f6   :  { %343 = vsyncadd [#allocation4], 4294967168 }
 0x1f7   :  { %344 = dma.done.wait [#allocation6], 32  }
 0x1f8   :  { %345 = vsyncadd [#allocation6], 4294967264 }
 0x1f9   :  { %208 = vsyncpa [#allocation4], 1 }
 0x1fa   :  { %209 = vsyncpa [#allocation6], 1 }

</bundles_post_ra>
